<compile_context>
chip_gen: v5e
topology: v5e:2x2
jax: 0.10.0
libtpu: 0.0.40
codegen_flags: <defaults>
</compile_context>

<pallas_src>
import functools

import numpy as np
import jax
import jax.numpy as jnp
from jax import lax
from jax.experimental import pallas as pl
from jax.experimental.pallas import tpu as pltpu

_MIB = 1024 * 1024


# ----------------------------------------------------------------------------
# Hardware introspection (defensive: fall back to conservative defaults).
# ----------------------------------------------------------------------------
def _device_kind() -> str:
    try:
        return jax.devices()[0].device_kind.lower()
    except Exception:
        return ""


def _vmem_capacity_bytes() -> int:
    try:
        return int(pltpu.get_tpu_info().vmem_capacity_bytes)
    except Exception:
        return 64 * _MIB          # v7x-sized conservative fallback


def _tensorcores_per_chip() -> int:
    # v7x exposes 2 TensorCores per chip; v5e/v6e have 1.
    return 2 if "7" in _device_kind() else 1


def _pick_compute_dtype(io_dtype, area):
    """bf16 math only on chips with a bf16 VPU (v6e+) and small windows."""
    if io_dtype == jnp.bfloat16 and area <= 9:
        kind = _device_kind()
        if kind and not any(v in kind for v in ("v2", "v3", "v4", "v5")):
            return jnp.bfloat16
    return jnp.float32


# ----------------------------------------------------------------------------
# In-kernel helpers.
# ----------------------------------------------------------------------------
def _roll_last(x, shift):
    """Circular roll along the last axis by a non-negative static shift.

    Only consumed in (+s, n-s) pairs, so the rotation direction of the native
    XLU path cannot change the summed result; the fallback matches torch.roll
    exactly (out[i] = x[(i - shift) % n]).
    """
    ax = x.ndim - 1
    n = x.shape[ax]
    s = shift % n
    if s == 0:
        return x
    if n % 128 == 0:
        return pltpu.roll(x, s, ax)          # native lane rotation (XLU slot)
    hi = lax.slice_in_dim(x, n - s, n, axis=ax)
    lo = lax.slice_in_dim(x, 0, n - s, axis=ax)
    return lax.concatenate([hi, lo], dimension=ax)


def _hsum_last(x, rx):
    """Horizontal pass: sum over circular rolls +-s (s=1..rx) along last axis."""
    n = x.shape[-1]
    out = x
    for s in range(1, rx + 1):
        e = s % n
        if e == 0:                           # shift is a multiple of W: identity
            out = out + x + x
        else:
            out = out + _roll_last(x, e) + _roll_last(x, n - e)
    return out


# ----------------------------------------------------------------------------
# Whole-plane kernel.
# ----------------------------------------------------------------------------
def _box_plane_kernel(x_ref, o_ref, hsum_ref, *acc_scratch, rx, ry, scale, cdtype):
    # Block: (TB, H, W); axis 1 = H (torch dim 2), axis 2 = W (torch dim 3).
    acc_ref = acc_scratch[0] if acc_scratch else o_ref   # alias when dtypes match
    x = x_ref[...].astype(cdtype)
    H = x.shape[1]

    # Horizontal pass, written once to the VMEM scratch.
    hsum_ref[...] = _hsum_last(x, rx)

    # Vertical pass: statically wrapped row-window adds read from the scratch,
    # accumulated in place (no rolled full-block SSA temporaries).
    acc_ref[...] = hsum_ref[...]                          # center (shift 0) term
    for s in range(1, ry + 1):
        e = s % H
        if e == 0:                                        # shift multiple of H
            acc_ref[...] = acc_ref[...] + hsum_ref[...] + hsum_ref[...]
            continue
        # roll(+e): out[e:H) <- hsum[0:H-e), out[0:e) <- hsum[H-e:H)
        acc_ref[:, pl.ds(e, H - e), :] = (
            acc_ref[:, pl.ds(e, H - e), :] + hsum_ref[:, pl.ds(0, H - e), :])
        acc_ref[:, pl.ds(0, e), :] = (
            acc_ref[:, pl.ds(0, e), :] + hsum_ref[:, pl.ds(H - e, e), :])
        # roll(-e): out[0:H-e) <- hsum[e:H), out[H-e:H) <- hsum[0:e)
        acc_ref[:, pl.ds(0, H - e), :] = (
            acc_ref[:, pl.ds(0, H - e), :] + hsum_ref[:, pl.ds(e, H - e), :])
        acc_ref[:, pl.ds(H - e, e), :] = (
            acc_ref[:, pl.ds(H - e, e), :] + hsum_ref[:, pl.ds(0, e), :])

    if acc_scratch or scale != 1.0:
        res = acc_ref[...]
        if scale != 1.0:
            res = res * scale                 # precomputed 1/area, no vector divide
        o_ref[...] = res.astype(o_ref.dtype)
    # else: the accumulator *is* the output block and already holds the result.


# ----------------------------------------------------------------------------
# H-strip kernel for planes too large for VMEM (manual halo DMAs, circular wrap).
# ----------------------------------------------------------------------------
def _box_strip_kernel(x_hbm, o_ref, xm_ref, xt_ref, xb_ref, hs_ref, sem,
                      *, rx, ry, scale, cdtype, H, SH):
    p = pl.program_id(0)                       # plane index
    i = pl.program_id(1)                       # strip index within the plane
    row0 = i * SH                              # first output row of this strip
    base = p * H                               # plane offset into (NC*H, W) input

    # Main strip rows [row0, row0+SH) plus circularly wrapped halo rows; each is
    # a single contiguous row segment because the wrapper enforces SH >= ry.
    cp_main = pltpu.make_async_copy(
        x_hbm.at[pl.ds(base + row0, SH)], xm_ref, sem.at[0])
    cp_main.start()
    if ry > 0:
        top = (row0 + (H - ry)) % H
        bot = (row0 + SH) % H
        cp_top = pltpu.make_async_copy(
            x_hbm.at[pl.ds(base + top, ry)], xt_ref, sem.at[1])
        cp_bot = pltpu.make_async_copy(
            x_hbm.at[pl.ds(base + bot, ry)], xb_ref, sem.at[2])
        cp_top.start()
        cp_bot.start()
        cp_top.wait()
        cp_bot.wait()
    cp_main.wait()
    # TODO(synk): double-buffer the strip DMAs across grid steps so the HBM
    # fetch overlaps compute (currently fetch and compute serialize per strip).

    if ry > 0:
        x = jnp.concatenate([xt_ref[...], xm_ref[...], xb_ref[...]], axis=0)
    else:
        x = xm_ref[...]
    x = x.astype(cdtype)                       # (SH + 2*ry, W)

    hs_ref[...] = _hsum_last(x, rx)            # horizontal sums incl. halo rows
    acc = hs_ref[pl.ds(ry, SH), :]             # center term of vertical window
    for s in range(1, ry + 1):
        acc = acc + hs_ref[pl.ds(ry - s, SH), :] + hs_ref[pl.ds(ry + s, SH), :]
    if scale != 1.0:
        acc = acc * scale
    o_ref[0] = acc.astype(o_ref.dtype)


# ----------------------------------------------------------------------------
# Wrappers.
# ----------------------------------------------------------------------------
def _pick_strip_rows(H, W, ry, it_in, it_c, usable, forced):
    """Choose a strip height: divides H, sublane aligned, covers the halo."""
    def per_step(sh):
        shh = sh + 2 * ry
        return (shh * W * it_in            # strip + halo buffers
                + shh * W * it_c           # horizontal-sum scratch
                + 2 * sh * W * it_in       # double-buffered output block
                + 3 * shh * W * it_c)      # accumulator + roll temporaries

    cands = [d for d in range(8, H, 8) if H % d == 0 and d >= max(ry, 1)]
    cands.sort(reverse=True)
    if not cands:
        return None
    if forced is not None:
        fit = [d for d in cands if d <= forced]
        return fit[0] if fit else cands[-1]
    for d in cands:
        if per_step(d) <= usable:
            return d
    return cands[-1]                        # smallest legal strip; best effort


def _box_filter_planes(x2, io_dtype, cdtype, rx, ry, scale, separate_acc,
                       target_block_bytes, usable, vmem_limit):
    NC, H, W = x2.shape
    it_in = np.dtype(io_dtype).itemsize
    it_c = np.dtype(cdtype).itemsize
    plane_in = H * W * it_in
    plane_c = H * W * it_c
    per_plane = 4 * plane_in + (2 if separate_acc else 1) * plane_c + 2 * plane_c

    tb = max(1, min(NC, target_block_bytes // max(plane_in, 1)))
    tb = max(1, min(tb, usable // max(per_plane, 1)))
    if NC >= 2:
        tb = min(tb, pl.cdiv(NC, 2))            # keep >= 2 grid steps
        if _tensorcores_per_chip() > 1 and pl.cdiv(NC, tb) % 2 == 1:
            # Prefer an even step count so both v7x TensorCores get equal work.
            for cand in range(tb, max(tb - 64, 1) - 1, -1):
                if pl.cdiv(NC, cand) % 2 == 0:
                    tb = cand
                    break
    grid = (pl.cdiv(NC, tb),)
    # NOTE: if NC % tb != 0 the last block is padded; the kernel is a pure
    # per-plane map, so padded planes never contaminate valid outputs.

    scratch = [pltpu.VMEM((tb, H, W), cdtype)]              # horizontal sums
    if separate_acc:
        scratch.append(pltpu.VMEM((tb, H, W), cdtype))      # f32 accumulator

    kernel = functools.partial(_box_plane_kernel, rx=rx, ry=ry, scale=scale,
                               cdtype=cdtype)
    return pl.pallas_call(
        kernel,
        out_shape=jax.ShapeDtypeStruct((NC, H, W), io_dtype),
        grid=grid,
        in_specs=[pl.BlockSpec((tb, H, W), lambda i: (i, 0, 0))],
        out_specs=pl.BlockSpec((tb, H, W), lambda i: (i, 0, 0)),
        scratch_shapes=scratch,
        compiler_params=pltpu.CompilerParams(
            dimension_semantics=("parallel",),
            vmem_limit_bytes=vmem_limit,
        ),
    )(x2)


def _box_filter_strips(x2, io_dtype, cdtype, rx, ry, scale, sh, vmem_limit):
    NC, H, W = x2.shape
    n_strips = H // sh
    x_flat = x2.reshape(NC * H, W)            # plane rows are contiguous
    halo = max(ry, 1)

    kernel = functools.partial(_box_strip_kernel, rx=rx, ry=ry, scale=scale,
                               cdtype=cdtype, H=H, SH=sh)
    return pl.pallas_call(
        kernel,
        out_shape=jax.ShapeDtypeStruct((NC, H, W), io_dtype),
        grid=(NC, n_strips),
        in_specs=[pl.BlockSpec(memory_space=pl.ANY)],
        out_specs=pl.BlockSpec((1, sh, W), lambda p, i: (p, i, 0)),
        scratch_shapes=[
            pltpu.VMEM((sh, W), io_dtype),            # main strip rows
            pltpu.VMEM((halo, W), io_dtype),          # top (wrapped) halo rows
            pltpu.VMEM((halo, W), io_dtype),          # bottom (wrapped) halo rows
            pltpu.VMEM((sh + 2 * ry, W), cdtype),     # horizontal-sum scratch
            pltpu.SemaphoreType.DMA((3,)),
        ],
        compiler_params=pltpu.CompilerParams(
            dimension_semantics=("parallel", "arbitrary"),
            vmem_limit_bytes=vmem_limit,
        ),
    )(x_flat)


def box_filter(x, window_size, reduction='mean', *, _force_strip_rows=None):
    """Circular box filter over dims (2, 3) of an NCHW tensor (BoxFilter.forward)."""
    if isinstance(window_size, (list, tuple)):
        wx, wy = window_size
    else:
        wx = wy = window_size
    assert wx % 2 == 1 and wy % 2 == 1, 'window size must be odd'
    assert reduction in ('mean', 'sum')
    rx, ry = wx // 2, wy // 2
    area = wx * wy
    scale = 1.0 if reduction == 'sum' else 1.0 / float(area)

    N, C, H, W = x.shape
    NC = N * C
    x2 = x.reshape(NC, H, W)

    io_dtype = x.dtype
    cdtype = _pick_compute_dtype(io_dtype, area)
    it_in = np.dtype(io_dtype).itemsize
    it_c = np.dtype(cdtype).itemsize
    separate_acc = np.dtype(cdtype) != np.dtype(io_dtype)

    # Generation-aware VMEM / block budget.
    vmem_cap = _vmem_capacity_bytes()
    if vmem_cap >= 100 * _MIB:          # v5e / v6e: 128 MiB physical VMEM
        vmem_limit = 64 * _MIB
        target_block_bytes = 4 * _MIB
    else:                               # v7x (or unknown): 64 MiB physical VMEM
        vmem_limit = 40 * _MIB
        target_block_bytes = 2 * _MIB
    usable = int(vmem_limit * 0.8)

    plane_in = H * W * it_in
    plane_c = H * W * it_c
    per_plane = 4 * plane_in + (2 if separate_acc else 1) * plane_c + 2 * plane_c

    sh = None
    if _force_strip_rows is not None or per_plane > usable:
        sh = _pick_strip_rows(H, W, ry, it_in, it_c, usable, _force_strip_rows)

    if sh is not None:
        out = _box_filter_strips(x2, io_dtype, cdtype, rx, ry, scale, sh, vmem_limit)
    else:
        out = _box_filter_planes(x2, io_dtype, cdtype, rx, ry, scale, separate_acc,
                                 target_block_bytes, usable, vmem_limit)
    return out.reshape(N, C, H, W)


# ----------------------------------------------------------------------------
# Pure-JAX reference (mirrors the PyTorch forward exactly).
# ----------------------------------------------------------------------------
def _box_filter_ref(x, window_size, reduction='mean'):
    wx, wy = window_size if isinstance(window_size, (list, tuple)) else (window_size, window_size)
    rx, ry = wx // 2, wy // 2
    acc = jnp.zeros_like(x)
    for xs in range(-rx, rx + 1):
        for ys in range(-ry, ry + 1):
            acc = acc + jnp.roll(x, shift=(ys, xs), axis=(2, 3))
    return acc if reduction == 'sum' else acc / (wx * wy)


if __name__ == "__main__":
    key = jax.random.PRNGKey(0)
    k1, k2, k3, k4 = jax.random.split(key, 4)

    x = jax.random.normal(k1, (2, 4, 16, 16), dtype=jnp.float32)

    # 3x3 mean (whole-plane path, accumulation directly in the output block).
    out = jax.block_until_ready(box_filter(x, window_size=3, reduction='mean'))
    ref = _box_filter_ref(x, window_size=3, reduction='mean')
    assert out.shape == x.shape and out.dtype == x.dtype
    assert jnp.allclose(out, ref, atol=1e-5, rtol=1e-5)

    # 3x3 sum reduction path.
    out_sum = jax.block_until_ready(box_filter(x, window_size=(3, 3), reduction='sum'))
    ref_sum = _box_filter_ref(x, window_size=(3, 3), reduction='sum')
    assert jnp.allclose(out_sum, ref_sum, atol=1e-5, rtol=1e-5)

    # 5x5 mean (multi-shift separable passes).
    out5 = jax.block_until_ready(box_filter(x, window_size=5, reduction='mean'))
    ref5 = _box_filter_ref(x, window_size=5, reduction='mean')
    assert jnp.allclose(out5, ref5, atol=1e-5, rtol=1e-5)

    # Non-divisible plane count (padded last block on a pure per-plane map).
    x3 = jax.random.normal(k2, (1, 3, 16, 16), dtype=jnp.float32)
    out3 = jax.block_until_ready(box_filter(x3, window_size=3, reduction='mean'))
    ref3 = _box_filter_ref(x3, window_size=3, reduction='mean')
    assert jnp.allclose(out3, ref3, atol=1e-5, rtol=1e-5)

    # bf16 input (bf16 math on v6e/v7x, f32 accumulation on v5e), loose tolerance.
    xb = jax.random.normal(k3, (2, 4, 16, 16), dtype=jnp.float32).astype(jnp.bfloat16)
    outb = jax.block_until_ready(box_filter(xb, window_size=3, reduction='mean'))
    refb = _box_filter_ref(xb.astype(jnp.float32), window_size=3, reduction='mean')
    assert outb.dtype == jnp.bfloat16
    assert jnp.allclose(outb.astype(jnp.float32), refb, atol=5e-2, rtol=0)

    # H-strip path (forced at a small size; exercises the wrapped halo DMAs).
    xs_in = jax.random.normal(k4, (1, 2, 32, 128), dtype=jnp.float32)
    out_s = jax.block_until_ready(
        box_filter(xs_in, window_size=3, reduction='mean', _force_strip_rows=8))
    ref_s = _box_filter_ref(xs_in, window_size=3, reduction='mean')
    assert jnp.allclose(out_s, ref_s, atol=1e-5, rtol=1e-5)

    out_s5 = jax.block_until_ready(
        box_filter(xs_in, window_size=(5, 5), reduction='sum', _force_strip_rows=8))
    ref_s5 = _box_filter_ref(xs_in, window_size=(5, 5), reduction='sum')
    assert jnp.allclose(out_s5, ref_s5, atol=1e-4, rtol=1e-5)

    print("KERNEL_OK")
</pallas_src>

<mosaic_0001>
module attributes {stable_mosaic.version = 11 : i64} {
  func.func @_box_plane_kernel(%arg0: i32, %arg1: memref<4x16x16xf32, #tpu.memory_space<vmem>>, %arg2: memref<4x16x16xf32, #tpu.memory_space<vmem>>, %arg3: memref<4x16x16xf32, #tpu.memory_space<vmem>>) attributes {dimension_semantics = [#tpu.dimension_semantics<parallel>], iteration_bounds = array<i64: 2>, scalar_prefetch = 0 : i64, scratch_operands = 1 : i64, tpu.core_type = #tpu.core_type<tc>, window_params = [{transform_indices = @transform_0, window_bounds = array<i64: 4, 16, 16>}, {transform_indices = @transform_1, window_bounds = array<i64: 4, 16, 16>}]} {
    %c0 = arith.constant 0 : index
    %c0_0 = arith.constant 0 : index
    %c0_1 = arith.constant 0 : index
    %0 = vector.load %arg1[%c0, %c0_0, %c0_1] : memref<4x16x16xf32, #tpu.memory_space<vmem>>, vector<4x16x16xf32>
    %1 = vector.extract_strided_slice %0 {offsets = [0, 0, 15], sizes = [4, 16, 1], strides = [1, 1, 1]} : vector<4x16x16xf32> to vector<4x16x1xf32>
    %2 = vector.extract_strided_slice %0 {offsets = [0, 0, 0], sizes = [4, 16, 15], strides = [1, 1, 1]} : vector<4x16x16xf32> to vector<4x16x15xf32>
    %3 = tpu.concatenate %1, %2 in 2 : vector<4x16x1xf32>, vector<4x16x15xf32> -> vector<4x16x16xf32>
    %4 = arith.addf %0, %3 : vector<4x16x16xf32>
    %5 = vector.extract_strided_slice %0 {offsets = [0, 0, 1], sizes = [4, 16, 15], strides = [1, 1, 1]} : vector<4x16x16xf32> to vector<4x16x15xf32>
    %6 = vector.extract_strided_slice %0 {offsets = [0, 0, 0], sizes = [4, 16, 1], strides = [1, 1, 1]} : vector<4x16x16xf32> to vector<4x16x1xf32>
    %7 = tpu.concatenate %5, %6 in 2 : vector<4x16x15xf32>, vector<4x16x1xf32> -> vector<4x16x16xf32>
    %8 = arith.addf %4, %7 : vector<4x16x16xf32>
    %c0_2 = arith.constant 0 : index
    %c0_3 = arith.constant 0 : index
    %c0_4 = arith.constant 0 : index
    %9 = vector.load %arg3[%c0_2, %c0_3, %c0_4] : memref<4x16x16xf32, #tpu.memory_space<vmem>>, vector<4x16x16xf32>
    tpu.vector_store %arg3[%c0_2, %c0_3, %c0_4], %8 {strides = array<i32>} : memref<4x16x16xf32, #tpu.memory_space<vmem>>, vector<4x16x16xf32>,
    %c0_5 = arith.constant 0 : index
    %c0_6 = arith.constant 0 : index
    %c0_7 = arith.constant 0 : index
    %10 = vector.load %arg3[%c0_5, %c0_6, %c0_7] : memref<4x16x16xf32, #tpu.memory_space<vmem>>, vector<4x16x16xf32>
    %c0_8 = arith.constant 0 : index
    %c0_9 = arith.constant 0 : index
    %c0_10 = arith.constant 0 : index
    %11 = vector.load %arg2[%c0_8, %c0_9, %c0_10] : memref<4x16x16xf32, #tpu.memory_space<vmem>>, vector<4x16x16xf32>
    tpu.vector_store %arg2[%c0_8, %c0_9, %c0_10], %10 {strides = array<i32>} : memref<4x16x16xf32, #tpu.memory_space<vmem>>, vector<4x16x16xf32>,
    %c0_11 = arith.constant 0 : index
    %c1 = arith.constant 1 : index
    %c0_12 = arith.constant 0 : index
    %12 = vector.load %arg2[%c0_11, %c1, %c0_12] : memref<4x16x16xf32, #tpu.memory_space<vmem>>, vector<4x15x16xf32>
    %c0_13 = arith.constant 0 : index
    %c0_14 = arith.constant 0 : index
    %c0_15 = arith.constant 0 : index
    %13 = vector.load %arg3[%c0_13, %c0_14, %c0_15] : memref<4x16x16xf32, #tpu.memory_space<vmem>>, vector<4x15x16xf32>
    %14 = arith.addf %12, %13 : vector<4x15x16xf32>
    %c0_16 = arith.constant 0 : index
    %c1_17 = arith.constant 1 : index
    %c0_18 = arith.constant 0 : index
    %15 = vector.load %arg2[%c0_16, %c1_17, %c0_18] : memref<4x16x16xf32, #tpu.memory_space<vmem>>, vector<4x15x16xf32>
    tpu.vector_store %arg2[%c0_16, %c1_17, %c0_18], %14 {strides = array<i32>} : memref<4x16x16xf32, #tpu.memory_space<vmem>>, vector<4x15x16xf32>,
    %c0_19 = arith.constant 0 : index
    %c0_20 = arith.constant 0 : index
    %c0_21 = arith.constant 0 : index
    %16 = vector.load %arg2[%c0_19, %c0_20, %c0_21] : memref<4x16x16xf32, #tpu.memory_space<vmem>>, vector<4x1x16xf32>
    %c0_22 = arith.constant 0 : index
    %c15 = arith.constant 15 : index
    %c0_23 = arith.constant 0 : index
    %17 = vector.load %arg3[%c0_22, %c15, %c0_23] : memref<4x16x16xf32, #tpu.memory_space<vmem>>, vector<4x1x16xf32>
    %18 = arith.addf %16, %17 : vector<4x1x16xf32>
    %c0_24 = arith.constant 0 : index
    %c0_25 = arith.constant 0 : index
    %c0_26 = arith.constant 0 : index
    %19 = vector.load %arg2[%c0_24, %c0_25, %c0_26] : memref<4x16x16xf32, #tpu.memory_space<vmem>>, vector<4x1x16xf32>
    tpu.vector_store %arg2[%c0_24, %c0_25, %c0_26], %18 {strides = array<i32>} : memref<4x16x16xf32, #tpu.memory_space<vmem>>, vector<4x1x16xf32>,
    %c0_27 = arith.constant 0 : index
    %c0_28 = arith.constant 0 : index
    %c0_29 = arith.constant 0 : index
    %20 = vector.load %arg2[%c0_27, %c0_28, %c0_29] : memref<4x16x16xf32, #tpu.memory_space<vmem>>, vector<4x15x16xf32>
    %c0_30 = arith.constant 0 : index
    %c1_31 = arith.constant 1 : index
    %c0_32 = arith.constant 0 : index
    %21 = vector.load %arg3[%c0_30, %c1_31, %c0_32] : memref<4x16x16xf32, #tpu.memory_space<vmem>>, vector<4x15x16xf32>
    %22 = arith.addf %20, %21 : vector<4x15x16xf32>
    %c0_33 = arith.constant 0 : index
    %c0_34 = arith.constant 0 : index
    %c0_35 = arith.constant 0 : index
    %23 = vector.load %arg2[%c0_33, %c0_34, %c0_35] : memref<4x16x16xf32, #tpu.memory_space<vmem>>, vector<4x15x16xf32>
    tpu.vector_store %arg2[%c0_33, %c0_34, %c0_35], %22 {strides = array<i32>} : memref<4x16x16xf32, #tpu.memory_space<vmem>>, vector<4x15x16xf32>,
    %c0_36 = arith.constant 0 : index
    %c15_37 = arith.constant 15 : index
    %c0_38 = arith.constant 0 : index
    %24 = vector.load %arg2[%c0_36, %c15_37, %c0_38] : memref<4x16x16xf32, #tpu.memory_space<vmem>>, vector<4x1x16xf32>
    %c0_39 = arith.constant 0 : index
    %c0_40 = arith.constant 0 : index
    %c0_41 = arith.constant 0 : index
    %25 = vector.load %arg3[%c0_39, %c0_40, %c0_41] : memref<4x16x16xf32, #tpu.memory_space<vmem>>, vector<4x1x16xf32>
    %26 = arith.addf %24, %25 : vector<4x1x16xf32>
    %c0_42 = arith.constant 0 : index
    %c15_43 = arith.constant 15 : index
    %c0_44 = arith.constant 0 : index
    %27 = vector.load %arg2[%c0_42, %c15_43, %c0_44] : memref<4x16x16xf32, #tpu.memory_space<vmem>>, vector<4x1x16xf32>
    tpu.vector_store %arg2[%c0_42, %c15_43, %c0_44], %26 {strides = array<i32>} : memref<4x16x16xf32, #tpu.memory_space<vmem>>, vector<4x1x16xf32>,
    %c0_45 = arith.constant 0 : index
    %c0_46 = arith.constant 0 : index
    %c0_47 = arith.constant 0 : index
    %28 = vector.load %arg2[%c0_45, %c0_46, %c0_47] : memref<4x16x16xf32, #tpu.memory_space<vmem>>, vector<4x16x16xf32>
    %cst = arith.constant 0.111111112 : f32
    %29 = vector.broadcast %cst : f32 to vector<4x16x16xf32>
    %30 = arith.mulf %28, %29 : vector<4x16x16xf32>
    %c0_48 = arith.constant 0 : index
    %c0_49 = arith.constant 0 : index
    %c0_50 = arith.constant 0 : index
    %31 = vector.load %arg2[%c0_48, %c0_49, %c0_50] : memref<4x16x16xf32, #tpu.memory_space<vmem>>, vector<4x16x16xf32>
    tpu.vector_store %arg2[%c0_48, %c0_49, %c0_50], %30 {strides = array<i32>} : memref<4x16x16xf32, #tpu.memory_space<vmem>>, vector<4x16x16xf32>,
    return
  }
  func.func @transform_0(%arg0: i32) -> (i32, i32, i32) {
    %c0_i32 = arith.constant 0 : i32
    %c0_i32_0 = arith.constant 0 : i32
    %c0_i32_1 = arith.constant 0 : i32
    return %arg0, %c0_i32, %c0_i32_0 : i32, i32, i32
  }
  func.func @transform_1(%arg0: i32) -> (i32, i32, i32) {
    %c0_i32 = arith.constant 0 : i32
    %c0_i32_0 = arith.constant 0 : i32
    %c0_i32_1 = arith.constant 0 : i32
    return %arg0, %c0_i32, %c0_i32_0 : i32, i32, i32
  }
}

</mosaic_0001>

<bundles_post_ra>
// kernel: tpu_custom_call.1
= control target key start
LH: loop header
LB: loop body
LE: loop exit
PB: predicated region body
PF: predicated region fallthrough
CT: control target
= control target key end

     0   :  { %6 = vsyncpa [#allocation4], 0  ;;  %s1049_s0 = inlined_call_operand.hbm [shape: f32[8,16,16], index: 0, kind: input, shape index: {}]   ;;  %s1050_s1 = inlined_call_operand.hbm [shape: f32[8,16,16], index: 1, kind: output, shape index: {}]  }
   0x1   :  { %8 = vsyncpa [#allocation4 + $0x1], 0 }
   0x2   :  { %9 = vsyncpa [#allocation5], 0 }
   0x3   :  { %11 = vsyncpa [#allocation5 + $0x1], 0  ;;  %s713_s6 = smov 0   ;;  %s715_s7 = smov 0  }
   0x4   :  { %s717_s8 = smov 0   ;;  %s719_s9 = smov 0  }
   0x5 LB: > { %s734_s10 = sadd.s32 4294967295, %s693_s9   ;;  %s523_s11 = sadd.s32 4294967294, %s693_s9   ;;  %s693_s9 = sphi %s719_s9, %s1060_s9   ;;  %s689_s8 = sphi %s717_s8, %s1059_s8   ;;  %s685_s7 = sphi %s715_s7, %s1058_s7   ;;  %s681_s6 = sphi %s713_s6, %s1057_s6  }
   0x6   : > { %s738_s12 = sadd.s32 1, %s693_s9   ;;  %s24_s13 = sadd.s32 1, %s689_s8 }
   0x7   : > { %s21_s14 = ssub.s32 %s693_s9, %s738_s12  ;;  %p31_p0 = scmp.ne.s32.totalorder %s689_s8, %s685_s7 }
   0x8   : > { %p22_p1 = scmp.eq.s32.totalorder %s21_s14, 0  ;;  %p32_p2 = scmp.eq.s32.totalorder %s693_s9, 0 }
   0x9   : > { %p37_p3 = scmp.ne.s32.totalorder %s685_s7, %s681_s6  ;;  %p38_p4 = scmp.eq.s32.totalorder %s734_s10, 0 }
   0xa   : > { %s750_s15 = scalar_select %p22_p1, %s689_s8, %s24_s13  }
   0xb   : > { %p752_p5 = por %p32_p2, %p31_p0  ;;  %p756_p6 = por %p38_p4, %p37_p3 }
   0xc   : > { %p61_p7 = scmp.eq.s32.totalorder %s734_s10, 1  ;;  %p67_p8 = scmp.eq.s32.totalorder %s523_s11, 1 }
   0xd   : > { %p555_p10 = scmp.lt.s32.totalorder %s693_s9, 2  ;;  %s87_s20 = sand.u32 1, %s689_s8  }
   0xe   : > { %p763_p11 = por %p61_p7, %p31_p0  ;;  %p767_p12 = por %p67_p8, %p37_p3 }
   0xf   : > { %s540_s21 = sshll.u32 %s693_s9, 6  ;;  %s526_s22 = sshll.u32 %s87_s20, 6 }
  0x10   : > { %s97_s25 = scalar_lea.hbm %s1049_s0, %s540_s21  ;;  %s91_s27 = scalar_lea.vmem [#allocation3], %s526_s22 }
  0x11   : > { %s98_s26 = sshll.u32 %s97_s25, 4  ;;  %s100_s28 = sshll.u32 %s91_s27, 4  ;;  %s99_s26 = int_to_ptr.hbm [resolvable:$true] %s98_s26  ;;  %s101_s28 = int_to_ptr.vmem [resolvable:$true] %s100_s28 }
  0x12   : > { %p778_p13 = pnand %p555_p10, %p752_p5  ;;  %p530_p0 = scmp.ge.s32.totalorder %s693_s9, 1 }
  0x13   : > { %p108_p1 = scmp.lt.s32.totalorder %s693_s9, 3  ;;  %s88_s30 = scalar_lea.sflag [#allocation4], %s87_s20 }
  0x14   : > { %s597_s2 = sshra.s32 %s99_s26, 4  ;;  %p601_p3 = pneg %p778_p13  ;;  %s598_s2 = int_to_ptr.hbm [resolvable:$true] %s597_s2 }
  0x15   : > { %s599_s3 = scalar_lea.hbm %s598_s2, 64  ;;  %s604_s11 = scalar_lea.hbm %s1049_s0, 128 }
  0x16   : > { %p600_p2 = scmp.ne.s32.totalorder %s598_s2, %s599_s3  ;;  %p605_p5 = scmp.lt.s32.totalorder %s598_s2, %s1049_s0 }
  0x17   : > { %p606_p8 = scmp.lt.s32.totalorder %s604_s11, %s599_s3 }
  0x18   : > { %p602_p4 = pnand %p601_p3, %p600_p2 }
  0x19   : > { %p607_p10 = por %p606_p8, %p605_p5 }
  0x1a   : > { %p603_p7 = pneg %p602_p4 }
  0x1c   : > { %p608_p9 = pnand %p607_p10, %p603_p7 }
  0x1e   : > { %611 = shalt.err (!%p608_p9)
}
  0x1f   : > { %s695_s16 = smov 128   ;;  %s696_s20 = smov 8  }
  0x20   : > { %550 = dma.hbm_to_vmem [thread:$0]  (!%p778_p13), %s99_s26, 1024, %s101_s28, %s88_s30, %s695_s16, %s695_s16, %s696_s20  }
  0x21   : > { %p109_p2 = pnand %p530_p0, %p108_p1 }
  0x22   : > { %s799_s21 = sand.u32 (!%p109_p2), 1, %s685_s7  }
  0x23   : > { %112 = sbr.rel (%p109_p2) target bundleno = 294 (0x126), region = 24  ;;  %s531_s22 = sshll.u32 (!%p109_p2), %s799_s21, 6 }
  0x24   : > { %s115_s23 = scalar_lea.sflag (!%p109_p2), [#allocation4], %s799_s21  ;;  %s118_s24 = scalar_lea.vmem (!%p109_p2), [#allocation3], %s531_s22 }
  0x28   : > { %672 = dma.done.wait (%p756_p6), %s115_s23, 1024  }
  0x29   : > { %674 = vsyncadd (%p756_p6), %s115_s23, 4294966272  ;;  %v809_v0 = vld [vmem:[%s118_s24 + $0x10] sm:$0xff]  ;;  %v811_v1 = vld [vmem:[%s118_s24] sm:$0xff]  ;;  %s697_s25 = smov 113   ;;  %s698_s17 = smov 1   ;;  %vm204_vm0 = vcmask 7168  }
  0x2a   : > { %v813_v2 = vld [vmem:[%s118_s24 + $0x20] sm:$0xff]  ;;  %160 = vrot.lane.b32.xlu1 %v809_v0, %s697_s25  ;;  %156 = vrot.lane.b32.xlu0 %v811_v1, %s697_s25  ;;  %v818_v3 = vld [vmem:[%s118_s24 + $0x18] sm:$0xff]  ;;  %s699_s26 = smov 127   ;;  %s700_s27 = smov 15   ;;  %vm269_vm1 = vcmask 121856   ;;  %vm286_vm2 = vcmask 130048  }
  0x2b   : > { %164 = vrot.lane.b32.xlu2 %v813_v2, %s697_s25  ;;  %v820_v4 = vld [vmem:[%s118_s24 + $0x8] sm:$0xff]  ;;  %v827_v6 = vld [vmem:[%s118_s24 + $0x38] sm:$0xff]  ;;  %v829_v7 = vld [vmem:[%s118_s24 + $0x30] sm:$0xff]  ;;  %s875_s28 = scalar_lea.vmem [#allocation6], %s531_s22  ;;  %vm336_vm3 = vcmask 129024   ;;  %vm356_vm4 = vcmask 122880  }
  0x2c   : > { %v822_v5 = vld [vmem:[%s118_s24 + $0x28] sm:$0xff]  ;;  %s542_s29 = sshll.u32 %s734_s10, 6  ;;  %s447_s4 = sshll.u32 %s875_s28, 4  ;;  %s448_s4 = int_to_ptr.vmem [resolvable:$true] %s447_s4 }
  0x2d   : > { %s446_s3 = scalar_lea.hbm %s1050_s1, %s542_s29  ;;  %s434_s10 = scalar_lea.sflag [#allocation5], %s799_s21 }
  0x2e   : > { %s449_s5 = sshll.u32 %s446_s3, 4  ;;  %s647_s20 = scalar_lea.hbm %s1050_s1, 128  ;;  %s450_s5 = int_to_ptr.hbm [resolvable:$true] %s449_s5 }
  0x2f   : > { %s641_s11 = sshra.s32 %s450_s5, 4  ;;  %s642_s11 = int_to_ptr.hbm [resolvable:$true] %s641_s11 }
  0x30   : > { %s643_s13 = scalar_lea.hbm %s642_s11, 64  ;;  %p648_p0 = scmp.lt.s32.totalorder %s642_s11, %s1050_s1 }
  0x31   : > { %p644_p6 = scmp.ne.s32.totalorder %s642_s11, %s643_s13  ;;  %p649_p1 = scmp.lt.s32.totalorder %s647_s20, %s643_s13 }
  0x32   : > { %162 = vrot.lane.b32.xlu1 %v818_v3, %s697_s25  ;;  %158 = vrot.lane.b32.xlu0 %v820_v4, %s697_s25 }
  0x33   : > { %166 = vrot.lane.b32.xlu2 %v822_v5, %s697_s25  ;;  %p645_p9 = pnand %p644_p6, %p763_p11  ;;  %p650_p3 = por %p649_p1, %p648_p0 }
  0x35   : > { %p646_p13 = pneg %p645_p9 }
  0x37   : > { %p651_p4 = pnand %p650_p3, %p646_p13 }
  0x3a   : > { %170 = vrot.lane.b32.xlu1 %v827_v6, %s697_s25  ;;  %168 = vrot.lane.b32.xlu0 %v829_v7, %s697_s25 }
  0x3b   : > { %180 = vrot.lane.b32.xlu2 %v811_v1, %s698_s17 }
  0x42   : > { %184 = vrot.lane.b32.xlu1 %v809_v0, %s698_s17  ;;  %182 = vrot.lane.b32.xlu0 %v820_v4, %s698_s17 }
  0x43   : > { %186 = vrot.lane.b32.xlu2 %v818_v3, %s698_s17 }
  0x4a   : > { %190 = vrot.lane.b32.xlu1 %v822_v5, %s698_s17  ;;  %188 = vrot.lane.b32.xlu0 %v813_v2, %s698_s17 }
  0x4b   : > { %192 = vrot.lane.b32.xlu2 %v829_v7, %s698_s17 }
  0x52   : > { %221 = vrot.lane.b32.xlu1 %v811_v1, %s699_s26  ;;  %194 = vrot.lane.b32.xlu0 %v827_v6, %s698_s17 }
  0x53   : > { %223 = vrot.lane.b32.xlu2 %v820_v4, %s699_s26 }
  0x5a   : > { %227 = vrot.lane.b32.xlu1 %v818_v3, %s699_s26  ;;  %225 = vrot.lane.b32.xlu0 %v809_v0, %s699_s26 }
  0x5b   : > { %229 = vrot.lane.b32.xlu2 %v813_v2, %s699_s26 }
  0x62   : > { %233 = vrot.lane.b32.xlu1 %v829_v7, %s699_s26  ;;  %231 = vrot.lane.b32.xlu0 %v822_v5, %s699_s26 }
  0x63   : > { %235 = vrot.lane.b32.xlu2 %v827_v6, %s699_s26 }
  0x6a   : > { %247 = vrot.lane.b32.xlu1 %v820_v4, %s700_s27  ;;  %245 = vrot.lane.b32.xlu0 %v811_v1, %s700_s27 }
  0x6b   : > { %249 = vrot.lane.b32.xlu2 %v809_v0, %s700_s27 }
  0x72   : > { %253 = vrot.lane.b32.xlu1 %v813_v2, %s700_s27  ;;  %251 = vrot.lane.b32.xlu0 %v818_v3, %s700_s27 }
  0x73   : > { %255 = vrot.lane.b32.xlu2 %v822_v5, %s700_s27 }
  0x7a   : > { %259 = vrot.lane.b32.xlu1 %v827_v6, %s700_s27  ;;  %257 = vrot.lane.b32.xlu0 %v829_v7, %s700_s27 }
  0x85   : > { %v165_v8 = vpop.permute.xlu2 %164 }
  0x8d   : > { %v167_v9 = vpop.permute.xlu2 %166 }
  0x95   : > { %v181_v10 = vpop.permute.xlu2 %180 }
  0x9c   : > { %v161_v11 = vpop.permute.xlu1 %160  ;;  %v157_v12 = vpop.permute.xlu0 %156 }
  0x9d   : > { %v205_v13 = vsel %vm204_vm0, %v157_v12, %v181_v10  ;;  %v187_v14 = vpop.permute.xlu2 %186 }
  0x9e   : > { %v213_v47 = vadd.f32 %v205_v13, %v811_v1 }
  0xa4   : > { %v163_v15 = vpop.permute.xlu1 %162  ;;  %v159_v16 = vpop.permute.xlu0 %158 }
  0xa5   : > { %v208_v17 = vsel %vm204_vm0, %v163_v15, %v187_v14  ;;  %v193_v18 = vpop.permute.xlu2 %192 }
  0xa6   : > { %v216_v62 = vadd.f32 %v208_v17, %v818_v3 }
  0xac   : > { %v171_v19 = vpop.permute.xlu1 %170  ;;  %v169_v20 = vpop.permute.xlu0 %168 }
  0xad   : > { %v860_v21 = vsel %vm204_vm0, %v169_v20, %v193_v18  ;;  %v224_v22 = vpop.permute.xlu2 %223 }
  0xae   : > { %v219_v12 = vadd.f32 %v860_v21, %v829_v7 }
  0xb4   : > { %v185_v23 = vpop.permute.xlu1 %184  ;;  %v183_v24 = vpop.permute.xlu0 %182 }
  0xb5   : > { %v230_v25 = vpop.permute.xlu2 %229  ;;  %v207_v32 = vsel %vm204_vm0, %v161_v11, %v185_v23  ;;  %v206_v46 = vsel %vm204_vm0, %v159_v16, %v183_v24 }
  0xb6   : > { %v215_v33 = vadd.f32 %v207_v32, %v809_v0  ;;  %v214_v48 = vadd.f32 %v206_v46, %v820_v4 }
  0xbc   : > { %v191_v26 = vpop.permute.xlu1 %190  ;;  %v189_v27 = vpop.permute.xlu0 %188 }
  0xbd   : > { %v862_v28 = vpop.permute.xlu2 %235  ;;  %v210_v38 = vsel %vm204_vm0, %v167_v9, %v191_v26  ;;  %v209_v56 = vsel %vm204_vm0, %v165_v8, %v189_v27 }
  0xbe   : > { %v218_v40 = vadd.f32 %v210_v38, %v822_v5  ;;  %v217_v57 = vadd.f32 %v209_v56, %v813_v2 }
  0xc4   : > { %v222_v29 = vpop.permute.xlu1 %221  ;;  %v195_v30 = vpop.permute.xlu0 %194 }
  0xc5   : > { %v250_v31 = vpop.permute.xlu2 %249  ;;  %v212_v2 = vsel %vm204_vm0, %v171_v19, %v195_v30 }
  0xc6   : > { %v220_v3 = vadd.f32 %v212_v2, %v827_v6 }
  0xcc   : > { %v228_v34 = vpop.permute.xlu1 %227  ;;  %v226_v35 = vpop.permute.xlu0 %225 }
  0xcd   : > { %v272_v36 = vsel %vm269_vm1, %v226_v35, %v250_v31  ;;  %v256_v39 = vpop.permute.xlu2 %255 }
  0xce   : > { %v280_v37 = vadd.f32 %v272_v36, %v215_v33 }
  0xd0   : > { %289 = vst.msk [vmem:[#allocation2 + $0x10] sm:$0xff] %vm286_vm2, %v280_v37 }
  0xd4   : > { %v234_v41 = vpop.permute.xlu1 %233  ;;  %v232_v42 = vpop.permute.xlu0 %231 }
  0xd5   : > { %v275_v43 = vsel %vm269_vm1, %v232_v42, %v256_v39 }
  0xd6   : > { %v283_v44 = vadd.f32 %v275_v43, %v218_v40 }
  0xd7   : > { %v871_v45 = vld [vmem:[#allocation2 + $0x10] sm:$0xff] }
  0xd8   : > { %305 = vst.msk [vmem:[%s875_s28 + $0x10] sm:$0xff] %vm286_vm2, %v871_v45 }
  0xd9   : > { %292 = vst.msk [vmem:[#allocation2 + $0x28] sm:$0xff] %vm286_vm2, %v283_v44 }
  0xdc   : > { %v248_v49 = vpop.permute.xlu1 %247  ;;  %v246_v50 = vpop.permute.xlu0 %245 }
  0xdd   : > { %v271_v51 = vsel %vm269_vm1, %v224_v22, %v248_v49  ;;  %v270_v52 = vsel %vm269_vm1, %v222_v29, %v246_v50 }
  0xde   : > { %v279_v53 = vadd.f32 %v271_v51, %v214_v48  ;;  %v278_v54 = vadd.f32 %v270_v52, %v213_v47 }
  0xdf   : > { %v345_v27 = vld [vmem:[%s875_s28 + $0x10] sm:$0x1] }
  0xe0   : > { %v300_v55 = vld [vmem:[#allocation2 + $0x28] sm:$0xff]  ;;  %288 = vst.msk [vmem:[#allocation2 + $0x8] sm:$0xff] %vm286_vm2, %v279_v53 }
  0xe1   : > { %308 = vst.msk [vmem:[%s875_s28 + $0x28] sm:$0xff] %vm286_vm2, %v300_v55  ;;  %v324_v4 = vld [vmem:[#allocation2 + $0x28] sm:$0x7f]  ;;  %v350_v31 = vld [vmem:[#allocation2 + $0x2f] sm:$0x1] }
  0xe2   : > { %287 = vst.msk [vmem:[#allocation2] sm:$0xff] %vm286_vm2, %v278_v54  ;;  %v374_v56 = vld [vmem:[#allocation2 + $0x29] sm:$0x7f] }
  0xe4   : > { %v254_v58 = vpop.permute.xlu1 %253  ;;  %v252_v59 = vpop.permute.xlu0 %251 }
  0xe5   : > { %v274_v60 = vsel %vm269_vm1, %v230_v25, %v254_v58  ;;  %v273_v61 = vsel %vm269_vm1, %v228_v34, %v252_v59 }
  0xe6   : > { %v282_v63 = vadd.f32 %v274_v60, %v217_v57  ;;  %v281_v5 = vadd.f32 %v273_v61, %v216_v62 }
  0xe7   : > { %v296_v0 = vld [vmem:[#allocation2 + $0x8] sm:$0xff] }
  0xe8   : > { %v316_v1 = vld [vmem:[%s875_s28 + $0x29] sm:$0x7f]  ;;  %304 = vst.msk [vmem:[%s875_s28 + $0x8] sm:$0xff] %vm286_vm2, %v296_v0 }
  0xe9   : > { %v332_v8 = vadd.f32 %v324_v4, %v316_v1  ;;  %v295_v9 = vld [vmem:[#allocation2] sm:$0xff]  ;;  %291 = vst.msk [vmem:[#allocation2 + $0x20] sm:$0xff] %vm286_vm2, %v282_v63  ;;  %v320_v6 = vld [vmem:[#allocation2 + $0x8] sm:$0x7f]  ;;  %v348_v20 = vld [vmem:[#allocation2 + $0xf] sm:$0x1] }
  0xea   : > { %303 = vst.msk [vmem:[%s875_s28] sm:$0xff] %vm286_vm2, %v295_v9  ;;  %v397_v36 = vld [vmem:[#allocation2] sm:$0x1]  ;;  %v370_v40 = vld [vmem:[#allocation2 + $0x9] sm:$0x7f]  ;;  %v369_v43 = vld [vmem:[#allocation2 + $0x1] sm:$0xff] }
  0xeb   : > { %341 = vst.msk [vmem:[%s875_s28 + $0x29] sm:$0x7f] %vm336_vm3, %v332_v8  ;;  %v398_v1 = vld [vmem:[#allocation2 + $0x10] sm:$0x1] }
  0xec   : > { %290 = vst.msk [vmem:[#allocation2 + $0x18] sm:$0xff] %vm286_vm2, %v281_v5  ;;  %v260_v10 = vpop.permute.xlu1 %259  ;;  %v258_v11 = vpop.permute.xlu0 %257 }
  0xed   : > { %v277_v13 = vsel %vm269_vm1, %v862_v28, %v260_v10  ;;  %v276_v14 = vsel %vm269_vm1, %v234_v41, %v258_v11 }
  0xee   : > { %v285_v15 = vadd.f32 %v277_v13, %v220_v3  ;;  %v284_v17 = vadd.f32 %v276_v14, %v219_v12 }
  0xef   : > { %v312_v16 = vld [vmem:[%s875_s28 + $0x9] sm:$0x7f] }
  0xf0   : > { %v328_v18 = vadd.f32 %v320_v6, %v312_v16  ;;  %v299_v19 = vld [vmem:[#allocation2 + $0x20] sm:$0xff]  ;;  %294 = vst.msk [vmem:[#allocation2 + $0x38] sm:$0xff] %vm286_vm2, %v285_v15 }
  0xf1   : > { %v311_v7 = vld [vmem:[%s875_s28 + $0x1] sm:$0xff]  ;;  %v344_v21 = vld [vmem:[%s875_s28] sm:$0x1]  ;;  %307 = vst.msk [vmem:[%s875_s28 + $0x20] sm:$0xff] %vm286_vm2, %v299_v19 }
  0xf2   : > { %337 = vst.msk [vmem:[%s875_s28 + $0x9] sm:$0x7f] %vm336_vm3, %v328_v18  ;;  %v327_v22 = vadd.f32 %v311_v7, %v295_v9  ;;  %v352_v23 = vadd.f32 %v348_v20, %v344_v21  ;;  %v395_v24 = vld [vmem:[%s875_s28 + $0x2f] sm:$0x1]  ;;  %v399_v25 = vld [vmem:[#allocation2 + $0x20] sm:$0x1] }
  0xf3   : > { %v403_v26 = vadd.f32 %v399_v25, %v395_v24  ;;  %v349_v28 = vld [vmem:[#allocation2 + $0x1f] sm:$0x1]  ;;  %293 = vst.msk [vmem:[#allocation2 + $0x30] sm:$0xff] %vm286_vm2, %v284_v17  ;;  %v322_v47 = vld [vmem:[#allocation2 + $0x18] sm:$0x7f]  ;;  %v373_v59 = vld [vmem:[#allocation2 + $0x21] sm:$0xff] }
  0xf4   : > { %335 = vst.msk [vmem:[%s875_s28 + $0x1] sm:$0xff] %vm286_vm2, %v327_v22  ;;  %v298_v29 = vld [vmem:[#allocation2 + $0x18] sm:$0xff]  ;;  %v353_v30 = vadd.f32 %v349_v28, %v345_v27 }
  0xf5   : > { %357 = vst.msk [vmem:[%s875_s28] sm:$0x1] %vm356_vm4, %v352_v23  ;;  %v371_v62 = vld [vmem:[#allocation2 + $0x11] sm:$0xff]  ;;  %v372_v9 = vld [vmem:[#allocation2 + $0x19] sm:$0x7f] }
  0xf6   : > { %407 = vst.msk [vmem:[%s875_s28 + $0x2f] sm:$0x1] %vm356_vm4, %v403_v26 }
  0xf7   : > { %306 = vst.msk [vmem:[%s875_s28 + $0x18] sm:$0xff] %vm286_vm2, %v298_v29  ;;  %v302_v32 = vld [vmem:[#allocation2 + $0x38] sm:$0xff] }
  0xf8   : > { %v315_v33 = vld [vmem:[%s875_s28 + $0x21] sm:$0xff]  ;;  %v346_v34 = vld [vmem:[%s875_s28 + $0x20] sm:$0x1]  ;;  %358 = vst.msk [vmem:[%s875_s28 + $0x10] sm:$0x1] %vm356_vm4, %v353_v30 }
  0xf9   : > { %v393_v35 = vld [vmem:[%s875_s28 + $0xf] sm:$0x1]  ;;  %v331_v37 = vadd.f32 %v315_v33, %v299_v19  ;;  %v354_v38 = vadd.f32 %v350_v31, %v346_v34  ;;  %310 = vst.msk [vmem:[%s875_s28 + $0x38] sm:$0xff] %vm286_vm2, %v302_v32  ;;  %v326_v54 = vld [vmem:[#allocation2 + $0x38] sm:$0x7f] }
  0xfa   : > { %v401_v39 = vadd.f32 %v397_v36, %v393_v35  ;;  %v301_v48 = vld [vmem:[#allocation2 + $0x30] sm:$0xff]  ;;  %v351_v3 = vld [vmem:[#allocation2 + $0x3f] sm:$0x1] }
  0xfb   : > { %v362_v41 = vld [vmem:[%s875_s28 + $0x8] sm:$0x7f]  ;;  %340 = vst.msk [vmem:[%s875_s28 + $0x21] sm:$0xff] %vm286_vm2, %v331_v37  ;;  %v400_v17 = vld [vmem:[#allocation2 + $0x30] sm:$0x1]  ;;  %v375_v29 = vld [vmem:[#allocation2 + $0x31] sm:$0xff] }
  0xfc   : > { %v361_v42 = vld [vmem:[%s875_s28] sm:$0xff]  ;;  %v378_v44 = vadd.f32 %v370_v40, %v362_v41  ;;  %405 = vst.msk [vmem:[%s875_s28 + $0xf] sm:$0x1] %vm356_vm4, %v401_v39  ;;  %v376_v22 = vld [vmem:[#allocation2 + $0x39] sm:$0x7f] }
  0xfd   : > { %v377_v46 = vadd.f32 %v369_v43, %v361_v42  ;;  %359 = vst.msk [vmem:[%s875_s28 + $0x20] sm:$0x1] %vm356_vm4, %v354_v38 }
  0xfe   : > { %386 = vst.msk [vmem:[%s875_s28 + $0x8] sm:$0x7f] %vm336_vm3, %v378_v44  ;;  %v313_v49 = vld [vmem:[%s875_s28 + $0x11] sm:$0xff]  ;;  %v314_v50 = vld [vmem:[%s875_s28 + $0x19] sm:$0x7f] }
  0xff   : > { %385 = vst.msk [vmem:[%s875_s28] sm:$0xff] %vm286_vm2, %v377_v46  ;;  %v329_v51 = vadd.f32 %v313_v49, %v871_v45  ;;  %v330_v52 = vadd.f32 %v322_v47, %v314_v50 }
 0x100   : > { %v318_v53 = vld [vmem:[%s875_s28 + $0x39] sm:$0x7f]  ;;  %309 = vst.msk [vmem:[%s875_s28 + $0x30] sm:$0xff] %vm286_vm2, %v301_v48 }
 0x101   : > { %338 = vst.msk [vmem:[%s875_s28 + $0x11] sm:$0xff] %vm286_vm2, %v329_v51  ;;  %v334_v55 = vadd.f32 %v326_v54, %v318_v53 }
 0x102   : > { %v366_v57 = vld [vmem:[%s875_s28 + $0x28] sm:$0x7f]  ;;  %339 = vst.msk [vmem:[%s875_s28 + $0x19] sm:$0x7f] %vm336_vm3, %v330_v52 }
 0x103   : > { %v382_v58 = vadd.f32 %v374_v56, %v366_v57  ;;  %343 = vst.msk [vmem:[%s875_s28 + $0x39] sm:$0x7f] %vm336_vm3, %v334_v55 }
 0x104   : > { %v365_v45 = vld [vmem:[%s875_s28 + $0x20] sm:$0xff] }
 0x105   : > { %v381_v60 = vadd.f32 %v373_v59, %v365_v45  ;;  %390 = vst.msk [vmem:[%s875_s28 + $0x28] sm:$0x7f] %vm336_vm3, %v382_v58  ;;  %v410_v61 = vld [vmem:[%s875_s28 + $0x8] sm:$0xff] }
 0x106   : > { %v409_v63 = vld [vmem:[%s875_s28] sm:$0xff]  ;;  %v418_v0 = vmul.f32 0.11111111, %v410_v61 }
 0x107   : > { %389 = vst.msk [vmem:[%s875_s28 + $0x20] sm:$0xff] %vm286_vm2, %v381_v60  ;;  %v317_v4 = vld [vmem:[%s875_s28 + $0x31] sm:$0xff]  ;;  %v347_v5 = vld [vmem:[%s875_s28 + $0x30] sm:$0x1]  ;;  %v417_v2 = vmul.f32 0.11111111, %v409_v63 }
 0x108   : > { %v363_v8 = vld [vmem:[%s875_s28 + $0x10] sm:$0xff]  ;;  %v333_v10 = vadd.f32 %v317_v4, %v301_v48  ;;  %426 = vst.msk [vmem:[%s875_s28 + $0x8] sm:$0xff] %vm286_vm2, %v418_v0  ;;  %v355_v6 = vadd.f32 %v351_v3, %v347_v5 }
 0x109   : > { %v364_v11 = vld [vmem:[%s875_s28 + $0x18] sm:$0x7f]  ;;  %v379_v12 = vadd.f32 %v371_v62, %v363_v8  ;;  %v394_v13 = vld [vmem:[%s875_s28 + $0x1f] sm:$0x1]  ;;  %425 = vst.msk [vmem:[%s875_s28] sm:$0xff] %vm286_vm2, %v417_v2 }
 0x10a   : > { %v380_v14 = vadd.f32 %v372_v9, %v364_v11  ;;  %v402_v15 = vadd.f32 %v398_v1, %v394_v13  ;;  %v396_v16 = vld [vmem:[%s875_s28 + $0x3f] sm:$0x1]  ;;  %342 = vst.msk [vmem:[%s875_s28 + $0x31] sm:$0xff] %vm286_vm2, %v333_v10 }
 0x10b   : > { %387 = vst.msk [vmem:[%s875_s28 + $0x10] sm:$0xff] %vm286_vm2, %v379_v12  ;;  %v404_v18 = vadd.f32 %v400_v17, %v396_v16 }
 0x10c   : > { %388 = vst.msk [vmem:[%s875_s28 + $0x18] sm:$0x7f] %vm336_vm3, %v380_v14  ;;  %v414_v19 = vld [vmem:[%s875_s28 + $0x28] sm:$0xff] }
 0x10d   : > { %406 = vst.msk [vmem:[%s875_s28 + $0x1f] sm:$0x1] %vm356_vm4, %v402_v15  ;;  %v422_v20 = vmul.f32 0.11111111, %v414_v19 }
 0x10e   : > { %360 = vst.msk [vmem:[%s875_s28 + $0x30] sm:$0x1] %vm356_vm4, %v355_v6  ;;  %v413_v7 = vld [vmem:[%s875_s28 + $0x20] sm:$0xff] }
 0x10f   : > { %408 = vst.msk [vmem:[%s875_s28 + $0x3f] sm:$0x1] %vm356_vm4, %v404_v18  ;;  %v421_v21 = vmul.f32 0.11111111, %v413_v7 }
 0x110   : > { %430 = vst.msk [vmem:[%s875_s28 + $0x28] sm:$0xff] %vm286_vm2, %v422_v20 }
 0x111   : > { %v368_v23 = vld [vmem:[%s875_s28 + $0x38] sm:$0x7f]  ;;  %429 = vst.msk [vmem:[%s875_s28 + $0x20] sm:$0xff] %vm286_vm2, %v421_v21 }
 0x112   : > { %v384_v24 = vadd.f32 %v376_v22, %v368_v23  ;;  %v411_v25 = vld [vmem:[%s875_s28 + $0x10] sm:$0xff] }
 0x113   : > { %v419_v26 = vmul.f32 0.11111111, %v411_v25 }
 0x114   : > { %392 = vst.msk [vmem:[%s875_s28 + $0x38] sm:$0x7f] %vm336_vm3, %v384_v24  ;;  %v412_v27 = vld [vmem:[%s875_s28 + $0x18] sm:$0xff] }
 0x115   : > { %v367_v28 = vld [vmem:[%s875_s28 + $0x30] sm:$0xff]  ;;  %v420_v30 = vmul.f32 0.11111111, %v412_v27  ;;  %427 = vst.msk [vmem:[%s875_s28 + $0x10] sm:$0xff] %vm286_vm2, %v419_v26 }
 0x116   : > { %v383_v31 = vadd.f32 %v375_v29, %v367_v28 }
 0x117   : > { %428 = vst.msk [vmem:[%s875_s28 + $0x18] sm:$0xff] %vm286_vm2, %v420_v30 }
 0x118   : > { %391 = vst.msk [vmem:[%s875_s28 + $0x30] sm:$0xff] %vm286_vm2, %v383_v31 }
 0x11b   : > { %v416_v32 = vld [vmem:[%s875_s28 + $0x38] sm:$0xff] }
 0x11c   : > { %v424_v33 = vmul.f32 0.11111111, %v416_v32 }
 0x11e   : > { %432 = vst.msk [vmem:[%s875_s28 + $0x38] sm:$0xff] %vm286_vm2, %v424_v33 }
 0x11f   : > { %v415_v34 = vld [vmem:[%s875_s28 + $0x30] sm:$0xff] }
 0x120   : > { %v423_v35 = vmul.f32 0.11111111, %v415_v34 }
 0x122   : > { %431 = vst.msk [vmem:[%s875_s28 + $0x30] sm:$0xff] %vm286_vm2, %v423_v35 }
 0x123   : > { %654 = shalt.err (!%p651_p4)
}
 0x124   : > { %s701_s21 = smov 128   ;;  %s702_s24 = smov 8  }
 0x125   : > { %545 = dma.vmem_to_hbm [thread:$0]  (%p763_p11), %s448_s4, 1024, %s450_s5, %s434_s10, %s701_s21, %s701_s21, %s702_s24  }
 0x126 PF: > { %s464_s25 = sand.u32 1, %s681_s6   ;;  %p1056_p7 = scmp.ge.s32.totalorder %s693_s9, 2 }
 0x127   : > { %s465_s17 = scalar_lea.sflag [#allocation5], %s464_s25 }
 0x128   : > { %p552_p5 = pnand %p1056_p7, %p767_p12 }
 0x12a   : > { %p553_p8 = pneg %p552_p5 }
 0x12c   : > { %676 = dma.done.wait (%p553_p8), %s465_s17, 1024  }
 0x12d   : > { %678 = vsyncadd (%p553_p8), %s465_s17, 4294966272  ;;  %p14_p10 = scmp.ge.s32.totalorder %s738_s12, 4   ;;  %s1057_s6 = smov %s685_s7 }
 0x12e   : > { %s1058_s7 = smov %s689_s8  ;;  %s1059_s8 = smov %s750_s15 }
 0x12f   : > { %s1060_s9 = smov %s738_s12  ;;  %16 = sbr.rel (!%p14_p10) target bundleno = 5 (0x5), region = 69 }
 0x134   :  { %471 = vsyncpa [#allocation4], 1 }
 0x135   :  { %473 = vsyncpa [#allocation4 + $0x1], 1 }
 0x136   :  { %474 = vsyncpa [#allocation5], 1 }
 0x137   :  { %476 = vsyncpa [#allocation5 + $0x1], 1 }

</bundles_post_ra>
